<compile_context>
chip_gen: v7x
topology: tpu7x:2x2x1
jax: 0.10.0
libtpu: 0.0.40
codegen_flags: <defaults>
</compile_context>

<pallas_src>
import functools
import math
from typing import NamedTuple

import jax
import jax.numpy as jnp
from jax import lax
from jax.experimental import pallas as pl
from jax.experimental.pallas import tpu as pltpu


def _round_up(x, n):
    return ((x + n - 1) // n) * n


def _vmem_budget():
    """Returns (per-W-tile byte budget, vmem_limit_bytes), generation aware."""
    cap = 64 * 1024 * 1024
    try:
        info = pltpu.get_tpu_info()
        cap = int(getattr(info, "vmem_capacity_bytes", cap))
    except Exception:
        pass
    if cap >= 96 * 1024 * 1024:
        # v5e / v6e: 128 MiB physical VMEM -> larger streamed tiles.
        return 16 * 1024 * 1024, 64 * 1024 * 1024
    # v7x: 64 MiB physical per TensorCore -> stay conservative.
    return 8 * 1024 * 1024, 40 * 1024 * 1024


class PreparedWeight(NamedTuple):
    w: jax.Array        # (C_pad, D_pad) in the MXU dtype (bf16 by default)
    w_inv: jax.Array    # (1, C_pad) f32, 1/||w_row|| (0 for padded columns)
    out_features: int
    in_features: int
    tc: int


def prepare_arc_weight(weight, *, mxu_dtype=jnp.bfloat16, tc=None):
    """Pad/cast the weight and precompute 1/||w_row|| once.

    Cache the result across calls -- the weight is a parameter, and this avoids
    re-reading the full CxD matrix (pad copy + norm reduce) on every forward.
    """
    C, D = weight.shape
    itemsize = jnp.dtype(mxu_dtype).itemsize
    D_pad = _round_up(D, 128)
    w_budget, _ = _vmem_budget()
    tc_cap = max(128, (w_budget // (D_pad * itemsize)) // 128 * 128)
    TC = tc if tc is not None else min(2048, _round_up(C, 128), tc_cap)
    assert TC % 128 == 0
    C_pad = _round_up(C, TC)

    w32 = weight.astype(jnp.float32)
    w_inv = lax.rsqrt(jnp.maximum(jnp.sum(w32 * w32, axis=1), 1e-24)).reshape(1, C)
    w_inv_p = jnp.pad(w_inv, ((0, 0), (0, C_pad - C)))
    w_p = jnp.pad(w32, ((0, C_pad - C), (0, D_pad - D))).astype(mxu_dtype)
    return PreparedWeight(w_p, w_inv_p, C, D, TC)


def _arc_margin_kernel(x_ref, w_ref, xinv_ref, winv_ref, label_ref, out_ref, *,
                       s, s_cos_m, s_sin_m, th, s_mm, easy_margin, c_tile):
    # x tile: (TB, D_pad)  W tile: (TC, D_pad)  -> raw logits (TB, TC) on MXU,
    # f32 accumulation.  Operands arrive pre-cast (bf16 by default).
    raw = lax.dot_general(
        x_ref[...], w_ref[...],
        dimension_numbers=(((1,), (1,)), ((), ())),
        preferred_element_type=jnp.float32,
    )  # (TB, TC)

    # Post-matmul outer-product rescale with precomputed f32 inverse norms:
    #   cosine = raw * (1/||x||) * (1/||w||)
    cosine = raw * xinv_ref[...] * winv_ref[...]          # (TB,TC)*(TB,1)*(1,TC)

    # one-hot(label) restricted to this C tile: global column = j*TC + lane.
    labels = label_ref[...]                                # (TB, 1) int32
    col_ids = pl.program_id(0) * c_tile + lax.broadcasted_iota(
        jnp.int32, cosine.shape, 1)
    is_label = col_ids == labels                           # (TB, TC)

    # Margin math only for the label column: gather each row's cosine at its
    # label (masked XLU row-reduce), then sqrt/threshold on a (TB,1) vector.
    cos_lab = jnp.sum(jnp.where(is_label, cosine, 0.0), axis=-1, keepdims=True)
    sin_lab = jnp.sqrt(jnp.maximum(1.0 - cos_lab * cos_lab, 0.0))
    phi_s = cos_lab * s_cos_m - sin_lab * s_sin_m          # s * cos(theta + m)
    if easy_margin:
        lab_val = jnp.where(cos_lab > 0.0, phi_s, cos_lab * s)
    else:
        lab_val = jnp.where(cos_lab > th, phi_s, cos_lab * s - s_mm)

    out_ref[...] = jnp.where(is_label, lab_val, cosine * s).astype(out_ref.dtype)


def arc_margin_product(x, weight, label, *, s=30.0, m=0.5, easy_margin=False,
                       tb=None, tc=None, mxu_dtype=jnp.bfloat16,
                       out_dtype=jnp.float32):
    """x: (B, in_features) f32, weight: (out_features, in_features) f32 or a
    PreparedWeight, label: (B,) int.  Returns (B, out_features) out_dtype.

    Default mxu_dtype=bfloat16 feeds the MXU bf16 operands (f32 accumulation);
    cosine error is ~1e-3 which can flip the threshold branch for label logits
    sitting exactly at cos(pi-m).  Pass mxu_dtype=jnp.float32 for bit-faithful
    f32 semantics.
    """
    if isinstance(weight, PreparedWeight):
        prep = weight
    else:
        prep = prepare_arc_weight(weight, mxu_dtype=mxu_dtype, tc=tc)

    B, D = x.shape
    assert D == prep.in_features, "in_features mismatch"
    C = prep.out_features
    C_pad, D_pad = prep.w.shape
    TC = prep.tc
    _, vmem_limit = _vmem_budget()

    TB = tb if tb is not None else min(256, _round_up(B, 8))
    assert TB % 8 == 0
    B_pad = _round_up(B, TB)

    # --- operand preparation (x norm precomputed in f32, operands pre-cast) --
    x32 = x.astype(jnp.float32)
    x_inv = lax.rsqrt(jnp.maximum(jnp.sum(x32 * x32, axis=1, keepdims=True),
                                  1e-24))                              # (B, 1)
    x_p = jnp.pad(x32, ((0, B_pad - B), (0, D_pad - D))).astype(prep.w.dtype)
    x_inv_p = jnp.pad(x_inv, ((0, B_pad - B), (0, 0)))
    lab = jnp.pad(label.reshape(-1).astype(jnp.int32),
                  (0, B_pad - B)).reshape(B_pad, 1)

    kernel = functools.partial(
        _arc_margin_kernel,
        s=float(s),
        s_cos_m=float(s) * math.cos(m),
        s_sin_m=float(s) * math.sin(m),
        th=math.cos(math.pi - m),
        s_mm=float(s) * math.sin(math.pi - m) * m,
        easy_margin=bool(easy_margin),
        c_tile=TC,
    )

    # Grid: C tiles outer, B tiles inner -> W's block index only depends on the
    # outer axis, so the full weight matrix is streamed from HBM exactly once.
    grid = (C_pad // TC, B_pad // TB)
    itemsize = jnp.dtype(prep.w.dtype).itemsize
    out = pl.pallas_call(
        kernel,
        out_shape=jax.ShapeDtypeStruct((B_pad, C_pad), out_dtype),
        grid_spec=pltpu.PrefetchScalarGridSpec(
            num_scalar_prefetch=0,
            grid=grid,
            in_specs=[
                pl.BlockSpec((TB, D_pad), lambda j, i: (i, 0)),   # x
                pl.BlockSpec((TC, D_pad), lambda j, i: (j, 0)),   # W (streamed once)
                pl.BlockSpec((TB, 1), lambda j, i: (i, 0)),       # 1/||x||
                pl.BlockSpec((1, TC), lambda j, i: (0, j)),       # 1/||w||
                pl.BlockSpec((TB, 1), lambda j, i: (i, 0)),       # labels
            ],
            out_specs=pl.BlockSpec((TB, TC), lambda j, i: (i, j)),
        ),
        compiler_params=pltpu.CompilerParams(
            dimension_semantics=("parallel", "parallel"),
            vmem_limit_bytes=vmem_limit,
        ),
        cost_estimate=pl.CostEstimate(
            flops=2 * B_pad * C_pad * D_pad,
            transcendentals=B_pad * (C_pad // TC),
            bytes_accessed=(itemsize * (B_pad * D_pad + C_pad * D_pad)
                            + jnp.dtype(out_dtype).itemsize * B_pad * C_pad
                            + 4 * (B_pad + C_pad + B_pad)),
        ),
    )(x_p, prep.w, x_inv_p, prep.w_inv, lab)
    return out[:B, :C]


def _xavier_uniform(key, out_features, in_features):
    # nn.init.xavier_uniform_ : U(-a, a), a = sqrt(6 / (fan_in + fan_out))
    a = (6.0 / (in_features + out_features)) ** 0.5
    return jax.random.uniform(
        key, (out_features, in_features), jnp.float32, minval=-a, maxval=a)


def _reference(x, weight, label, s, m, easy_margin):
    xn = x / jnp.maximum(jnp.linalg.norm(x, axis=1, keepdims=True), 1e-12)
    wn = weight / jnp.maximum(jnp.linalg.norm(weight, axis=1, keepdims=True), 1e-12)
    cosine = xn @ wn.T
    sine = jnp.sqrt(jnp.maximum(1.0 - cosine * cosine, 0.0))
    phi = cosine * math.cos(m) - sine * math.sin(m)
    if easy_margin:
        phi = jnp.where(cosine > 0.0, phi, cosine)
    else:
        phi = jnp.where(cosine > math.cos(math.pi - m), phi,
                        cosine - math.sin(math.pi - m) * m)
    one_hot = jax.nn.one_hot(label, weight.shape[0], dtype=jnp.float32)
    return s * (one_hot * phi + (1.0 - one_hot) * cosine)


if __name__ == "__main__":
    key = jax.random.PRNGKey(0)
    k1, k2, k3, k4, k5, k6, k7, k8, k9 = jax.random.split(key, 9)
    s, m = 30.0, 0.5

    # Case 1: small shapes consistent with the original test harness (f32 MXU
    # mode -> tight tolerance against the f32 reference).
    B, D, C = 8, 32, 16
    x = jax.random.normal(k1, (B, D), jnp.float32)
    w = _xavier_uniform(k2, C, D)
    lab = jax.random.randint(k3, (B,), 0, C, jnp.int32)
    out = jax.block_until_ready(
        arc_margin_product(x, w, lab, s=s, m=m, mxu_dtype=jnp.float32))
    ref = _reference(x, w, lab, s, m, False)
    assert out.shape == (B, C)
    assert jnp.allclose(out, ref, atol=1e-4, rtol=1e-4), (
        f"case1 max abs err {jnp.max(jnp.abs(out - ref))}")

    # Case 2: forces a multi-tile (C, B) grid to exercise padding, slicing and
    # the per-C-tile one-hot column offset (still small, f32 MXU mode).
    B2, D2, C2 = 24, 96, 200
    x2 = jax.random.normal(k4, (B2, D2), jnp.float32)
    w2 = _xavier_uniform(k5, C2, D2)
    lab2 = jax.random.randint(k6, (B2,), 0, C2, jnp.int32)
    out2 = jax.block_until_ready(
        arc_margin_product(x2, w2, lab2, s=s, m=m, tb=8, tc=128,
                           mxu_dtype=jnp.float32))
    ref2 = _reference(x2, w2, lab2, s, m, False)
    assert out2.shape == (B2, C2)
    assert jnp.allclose(out2, ref2, atol=1e-4, rtol=1e-4), (
        f"case2 max abs err {jnp.max(jnp.abs(out2 - ref2))}")

    # Case 3: default (bf16 MXU) fast path with a prepared (cached) weight;
    # looser tolerance since the operands are bf16 (~1e-3 cosine error * s).
    B3, D3, C3 = 32, 64, 300
    x3 = jax.random.normal(k7, (B3, D3), jnp.float32)
    w3 = _xavier_uniform(k8, C3, D3)
    lab3 = jax.random.randint(k9, (B3,), 0, C3, jnp.int32)
    prep3 = prepare_arc_weight(w3)               # cache across calls
    out3 = jax.block_until_ready(
        arc_margin_product(x3, prep3, lab3, s=s, m=m))
    ref3 = _reference(x3, w3, lab3, s, m, False)
    assert out3.shape == (B3, C3)
    assert jnp.allclose(out3, ref3, atol=0.25, rtol=0.0), (
        f"case3 max abs err {jnp.max(jnp.abs(out3 - ref3))}")

    print("KERNEL_OK")
</pallas_src>

<mosaic_0001>
module attributes {stable_mosaic.version = 11 : i64} {
  func.func @_arc_margin_kernel(%arg0: i32, %arg1: i32, %arg2: memref<8x128xf32, #tpu.memory_space<vmem>>, %arg3: memref<128x128xf32, #tpu.memory_space<vmem>>, %arg4: memref<8x1xf32, #tpu.memory_space<vmem>>, %arg5: memref<1x128xf32, #tpu.memory_space<vmem>>, %arg6: memref<8x1xi32, #tpu.memory_space<vmem>>, %arg7: memref<8x128xf32, #tpu.memory_space<vmem>>) attributes {dimension_semantics = [#tpu.dimension_semantics<parallel>, #tpu.dimension_semantics<parallel>], iteration_bounds = array<i64: 1, 1>, scalar_prefetch = 0 : i64, scratch_operands = 0 : i64, tpu.core_type = #tpu.core_type<tc>, window_params = [{transform_indices = @transform_0, window_bounds = array<i64: 8, 128>}, {transform_indices = @transform_1, window_bounds = array<i64: 128, 128>}, {transform_indices = @transform_2, window_bounds = array<i64: 8, 1>}, {transform_indices = @transform_3, window_bounds = array<i64: 1, 128>}, {transform_indices = @transform_4, window_bounds = array<i64: 8, 1>}, {transform_indices = @transform_5, window_bounds = array<i64: 8, 128>}]} {
    %c0 = arith.constant 0 : index
    %c0_0 = arith.constant 0 : index
    %0 = vector.load %arg2[%c0, %c0_0] : memref<8x128xf32, #tpu.memory_space<vmem>>, vector<8x128xf32>
    %c0_1 = arith.constant 0 : index
    %c0_2 = arith.constant 0 : index
    %1 = vector.load %arg3[%c0_1, %c0_2] : memref<128x128xf32, #tpu.memory_space<vmem>>, vector<128x128xf32>
    %cst = arith.constant dense<0.000000e+00> : vector<8x128xf32>
    %2 = tpu.matmul %0, %1, %cst {dimension_numbers = #tpu.dot_dimension_numbers<[1], [1], [0], [0], [0, 0, 1, 0], [], []>} : vector<8x128xf32>, vector<128x128xf32>, vector<8x128xf32> -> vector<8x128xf32>
    %c0_3 = arith.constant 0 : index
    %c0_4 = arith.constant 0 : index
    %3 = vector.load %arg4[%c0_3, %c0_4] : memref<8x1xf32, #tpu.memory_space<vmem>>, vector<8x1xf32>
    %4 = vector.broadcast %3 : vector<8x1xf32> to vector<8x128xf32>
    %5 = arith.mulf %2, %4 : vector<8x128xf32>
    %c0_5 = arith.constant 0 : index
    %c0_6 = arith.constant 0 : index
    %6 = vector.load %arg5[%c0_5, %c0_6] : memref<1x128xf32, #tpu.memory_space<vmem>>, vector<1x128xf32>
    %7 = vector.broadcast %6 : vector<1x128xf32> to vector<8x128xf32>
    %8 = arith.mulf %5, %7 : vector<8x128xf32>
    %c0_7 = arith.constant 0 : index
    %c0_8 = arith.constant 0 : index
    %9 = vector.load %arg6[%c0_7, %c0_8] : memref<8x1xi32, #tpu.memory_space<vmem>>, vector<8x1xi32>
    %c128_i32 = arith.constant 128 : i32
    %10 = arith.muli %arg0, %c128_i32 : i32
    %11 = tpu.iota {dimensions = array<i32: 1>} : vector<8x128xi32>
    %12 = vector.broadcast %10 : i32 to vector<8x128xi32>
    %13 = arith.addi %12, %11 : vector<8x128xi32>
    %14 = vector.broadcast %9 : vector<8x1xi32> to vector<8x128xi32>
    %15 = arith.cmpi eq, %13, %14 : vector<8x128xi32>
    %cst_9 = arith.constant 0.000000e+00 : f32
    %16 = vector.broadcast %cst_9 : f32 to vector<8x128xf32>
    %17 = arith.select %15, %8, %16 : vector<8x128xi1>, vector<8x128xf32>
    %cst_10 = arith.constant dense<0.000000e+00> : vector<8xf32>
    %18 = vector.multi_reduction <add>, %17, %cst_10 [1] : vector<8x128xf32> to vector<8xf32>
    %19 = vector.shape_cast %18 : vector<8xf32> to vector<8x1xf32>
    %20 = arith.mulf %19, %19 : vector<8x1xf32>
    %cst_11 = arith.constant 1.000000e+00 : f32
    %21 = vector.broadcast %cst_11 : f32 to vector<8x1xf32>
    %22 = arith.subf %21, %20 : vector<8x1xf32>
    %cst_12 = arith.constant 0.000000e+00 : f32
    %23 = vector.broadcast %cst_12 : f32 to vector<8x1xf32>
    %24 = arith.maximumf %22, %23 : vector<8x1xf32>
    %25 = math.sqrt %24 : vector<8x1xf32>
    %cst_13 = arith.constant 26.3274765 : f32
    %26 = vector.broadcast %cst_13 : f32 to vector<8x1xf32>
    %27 = arith.mulf %19, %26 : vector<8x1xf32>
    %cst_14 = arith.constant 14.3827658 : f32
    %28 = vector.broadcast %cst_14 : f32 to vector<8x1xf32>
    %29 = arith.mulf %25, %28 : vector<8x1xf32>
    %30 = arith.subf %27, %29 : vector<8x1xf32>
    %cst_15 = arith.constant -0.87758255 : f32
    %31 = vector.broadcast %cst_15 : f32 to vector<8x1xf32>
    %32 = arith.cmpf ogt, %19, %31 : vector<8x1xf32>
    %cst_16 = arith.constant 3.000000e+01 : f32
    %33 = vector.broadcast %cst_16 : f32 to vector<8x1xf32>
    %34 = arith.mulf %19, %33 : vector<8x1xf32>
    %cst_17 = arith.constant 7.19138288 : f32
    %35 = vector.broadcast %cst_17 : f32 to vector<8x1xf32>
    %36 = arith.subf %34, %35 : vector<8x1xf32>
    %37 = arith.select %32, %30, %36 : vector<8x1xi1>, vector<8x1xf32>
    %cst_18 = arith.constant 3.000000e+01 : f32
    %38 = vector.broadcast %cst_18 : f32 to vector<8x128xf32>
    %39 = arith.mulf %8, %38 : vector<8x128xf32>
    %40 = vector.shape_cast %37 : vector<8x1xf32> to vector<8x1xf32>
    %41 = vector.broadcast %40 : vector<8x1xf32> to vector<8x128xf32>
    %42 = arith.select %15, %41, %39 : vector<8x128xi1>, vector<8x128xf32>
    %c0_19 = arith.constant 0 : index
    %c0_20 = arith.constant 0 : index
    %43 = vector.load %arg7[%c0_19, %c0_20] : memref<8x128xf32, #tpu.memory_space<vmem>>, vector<8x128xf32>
    tpu.vector_store %arg7[%c0_19, %c0_20], %42 {strides = array<i32>} : memref<8x128xf32, #tpu.memory_space<vmem>>, vector<8x128xf32>,
    return
  }
  func.func @transform_0(%arg0: i32, %arg1: i32) -> (i32, i32) {
    %c0_i32 = arith.constant 0 : i32
    %c0_i32_0 = arith.constant 0 : i32
    return %arg1, %c0_i32 : i32, i32
  }
  func.func @transform_1(%arg0: i32, %arg1: i32) -> (i32, i32) {
    %c0_i32 = arith.constant 0 : i32
    %c0_i32_0 = arith.constant 0 : i32
    return %arg0, %c0_i32 : i32, i32
  }
  func.func @transform_2(%arg0: i32, %arg1: i32) -> (i32, i32) {
    %c0_i32 = arith.constant 0 : i32
    %c0_i32_0 = arith.constant 0 : i32
    return %arg1, %c0_i32 : i32, i32
  }
  func.func @transform_3(%arg0: i32, %arg1: i32) -> (i32, i32) {
    %c0_i32 = arith.constant 0 : i32
    %c0_i32_0 = arith.constant 0 : i32
    return %c0_i32, %arg0 : i32, i32
  }
  func.func @transform_4(%arg0: i32, %arg1: i32) -> (i32, i32) {
    %c0_i32 = arith.constant 0 : i32
    %c0_i32_0 = arith.constant 0 : i32
    return %arg1, %c0_i32 : i32, i32
  }
  func.func @transform_5(%arg0: i32, %arg1: i32) -> (i32, i32) {
    %c0_i32 = arith.constant 0 : i32
    return %arg1, %arg0 : i32, i32
  }
}

</mosaic_0001>

<bundles_post_ra>
// kernel: tpu_custom_call.1
= control target key start
LH: loop header
LB: loop body
LE: loop exit
PB: predicated region body
PF: predicated region fallthrough
CT: control target
= control target key end

     0   :  { %10 = vsyncpa [#allocation3], 0  ;;  %s398_s0 = inlined_call_operand.vmem [shape: f32[8,128], index: 0, kind: input, shape index: {}]   ;;  %s399_s1 = inlined_call_operand.hbm [shape: f32[128,128], index: 1, kind: input, shape index: {}]   ;;  %s400_s2 = inlined_call_operand.vmem [shape: f32[8,1], index: 2, kind: input, shape index: {}]   ;;  %s401_s3 = inlined_call_operand.vmem [shape: f32[1,128], index: 3, kind: input, shape index: {}]   ;;  %s402_s4 = inlined_call_operand.vmem [shape: s32[8,1], index: 4, kind: input, shape index: {}]   ;;  %s403_s5 = inlined_call_operand.hbm [shape: f32[8,128], index: 5, kind: output, shape index: {}]  }
   0x1   :  { %11 = vsyncpa [#allocation4], 0  ;;  %s322_s18 = smov [#allocation2]   ;;  %s274_s22 = scalar_lea.hbm %s399_s1, 2048 }
   0x2   :  { %s19_s19 = sshll.u32 %s322_s18, 4  ;;  %p275_p0 = scmp.ne.s32.totalorder %s399_s1, %s274_s22  ;;  %s20_s19 = int_to_ptr.vmem [resolvable:$true] %s19_s19 }
   0x3   :  { %p278_p1 = scmp.lt.u32.totalorder %s274_s22, %s399_s1 }
   0x5   :  { %p280_p2 = pnand %p278_p1, %p275_p0 }
   0x7   :  { %283 = shalt.err (!%p280_p2)
}
   0x8   :  { %s284_s27 = scalar_lea.vmem %s20_s19, 2048  ;;  %p289_p4 = scmp.lt.s32.totalorder %s20_s19, %s20_s19 }
   0x9   :  { %p285_p3 = scmp.ne.s32.totalorder %s20_s19, %s284_s27  ;;  %p290_p5 = scmp.lt.s32.totalorder %s284_s27, %s284_s27 }
   0xb   :  { %p291_p6 = por %p290_p5, %p289_p4 }
   0xd   :  { %p292_p7 = pnand %p291_p6, %p285_p3 }
   0xf   :  { %295 = shalt.err (!%p292_p7)
}
  0x10   :  { %s323_s28 = smov 128   ;;  %s324_s29 = smov 8  }
  0x11   :  { %25 = dma.hbm_to_vmem [thread:$0]  %s399_s1, 2048, %s20_s19, [#allocation3], %s323_s28, %s323_s28, %s324_s29  }
  0x12   :  { %318 = dma.done.wait [#allocation3], 2048  }
  0x13   :  { %319 = vsyncadd [#allocation3], 4294965248  ;;  %v325_v0 = vmov 0.0|0.0   ;;  %vm326_vm0 = vmmov 0   ;;  %v327_v1 = vmov 0.0   ;;  %v328_v2 = vmov 0  }
  0x14   :  { %239 = vmatprep.subr.bf16.mxu0 %v325_v0  ;;  %236 = vmatprep.mubr.msk.f32.mxu0 %vm326_vm0, %v327_v1  ;;  %v36_v3 = vld [vmem:[#allocation2] sm:$0xff]  ;;  %v37_v4 = vld [vmem:[#allocation2 + $0x8] sm:$0xff]  ;;  %v38_v6 = vld [vmem:[#allocation2 + $0x10] sm:$0xff]  ;;  %v139_v31 = vlaneseq }
  0x15   :  { %271 = vset.pattern.permute.xlu0 %v328_v2  ;;  %v240_v5 = vpack.c.bf16 %v37_v4, %v36_v3  ;;  %v39_v7 = vld [vmem:[#allocation2 + $0x18] sm:$0xff]  ;;  %v122_v8 = vld [vmem:[%s400_s2] sm:$0xff]  ;;  %v41_v12 = vld [vmem:[#allocation2 + $0x28] sm:$0xff] }
  0x16   :  { %125 = vperm.xlu0 %271, %v122_v8   ;;  %v243_v9 = vpack.c.bf16 %v39_v7, %v38_v6  ;;  %v137_v10 = vld [vmem:[%s402_s4] sm:$0xff]  ;;  %v42_v14 = vld [vmem:[#allocation2 + $0x30] sm:$0xff]  ;;  %v43_v15 = vld [vmem:[#allocation2 + $0x38] sm:$0xff]  ;;  %v140_v32 = vand.u32 127, %v139_v31 }
  0x17   :  { %241 = vmatpush3.bf16.xpose.msra.mxu0 %v240_v5  ;;  %v40_v11 = vld [vmem:[#allocation2 + $0x20] sm:$0xff]  ;;  %v249_v16 = vpack.c.bf16 %v43_v15, %v42_v14  ;;  %v45_v18 = vld [vmem:[#allocation2 + $0x48] sm:$0xff]  ;;  %v46_v20 = vld [vmem:[#allocation2 + $0x50] sm:$0xff] }
  0x18   :  { %242 = vmatprep.subr.bf16.mxu0 %v325_v0  ;;  %v246_v13 = vpack.c.bf16 %v41_v12, %v40_v11  ;;  %v44_v17 = vld [vmem:[#allocation2 + $0x40] sm:$0xff]  ;;  %v47_v21 = vld [vmem:[#allocation2 + $0x58] sm:$0xff]  ;;  %v49_v24 = vld [vmem:[#allocation2 + $0x68] sm:$0xff] }
  0x19   :  { %v252_v19 = vpack.c.bf16 %v45_v18, %v44_v17  ;;  %v255_v22 = vpack.c.bf16 %v47_v21, %v46_v20  ;;  %v48_v23 = vld [vmem:[#allocation2 + $0x60] sm:$0xff]  ;;  %v50_v26 = vld [vmem:[#allocation2 + $0x70] sm:$0xff]  ;;  %v51_v27 = vld [vmem:[#allocation2 + $0x78] sm:$0xff] }
  0x1a   :  { %144 = vperm.xlu0 %271, %v137_v10   ;;  %v258_v25 = vpack.c.bf16 %v49_v24, %v48_v23  ;;  %v261_v28 = vpack.c.bf16 %v51_v27, %v50_v26  ;;  %v35_v29 = vld [vmem:[%s398_s0] sm:$0xff]  ;;  %s329_s0 = smov [#allocation5]  }
  0x1b   :  { %v185_v34 = vld [vmem:[%s401_s3] ss:$0 sm:$0xff]  ;;  %s176_s3 = sshll.u32 %s329_s0, 4  ;;  %s177_s3 = int_to_ptr.vmem [resolvable:$true] %s176_s3 }
  0x1c   :  { %s296_s12 = scalar_lea.vmem %s177_s3, 128  ;;  %p301_p9 = scmp.lt.s32.totalorder %s177_s3, %s177_s3 }
  0x1d   :  { %p297_p8 = scmp.ne.s32.totalorder %s177_s3, %s296_s12  ;;  %p302_p10 = scmp.lt.s32.totalorder %s296_s12, %s296_s12 }
  0x1f   :  { %244 = vmatpush3.bf16.xpose.msra.mxu0 %v243_v9  ;;  %p303_p11 = por %p302_p10, %p301_p9 }
  0x20   :  { %245 = vmatprep.subr.bf16.mxu0 %v325_v0 }
  0x21   :  { %p304_p12 = pnand %p303_p11, %p297_p8 }
  0x27   :  { %247 = vmatpush3.bf16.xpose.msra.mxu0 %v246_v13 }
  0x28   :  { %248 = vmatprep.subr.bf16.mxu0 %v325_v0 }
  0x2f   :  { %250 = vmatpush3.bf16.xpose.msra.mxu0 %v249_v16 }
  0x30   :  { %251 = vmatprep.subr.bf16.mxu0 %v325_v0 }
  0x37   :  { %253 = vmatpush3.bf16.xpose.msra.mxu0 %v252_v19 }
  0x38   :  { %254 = vmatprep.subr.bf16.mxu0 %v325_v0 }
  0x3f   :  { %256 = vmatpush3.bf16.xpose.msra.mxu0 %v255_v22 }
  0x40   :  { %257 = vmatprep.subr.bf16.mxu0 %v325_v0 }
  0x47   :  { %259 = vmatpush3.bf16.xpose.msra.mxu0 %v258_v25 }
  0x48   :  { %260 = vmatprep.subr.bf16.mxu0 %v325_v0 }
  0x4f   :  { %262 = vmatpush3.bf16.xpose.msra.mxu0 %v261_v28 }
  0x56   :  { %237 = vmatmul.mubr.f32.vlgmr.msra.gmra.mrb[0].mxu0 %v35_v29 }
  0x95   :  { %v126_v30 = vpop.permute.xlu0 %125 }
  0x99   :  { %v145_v35 = vpop.permute.xlu0 %144 }
  0x9a   :  { %vm146_vm1 = vcmp.eq.s32.totalorder %v140_v32, %v145_v35 }
 0x129   :  { %v118_v33 = vpop.f32.mrb[0].mxu0 }
 0x12a   :  { %v128_v36 = vmul.f32 %v126_v30, %v118_v33  ;;  %v238_v37 = vpop.f32.mrb[1].mxu0 }
 0x12c   :  { %v136_v38 = vmul.f32 %v185_v34, %v128_v36 }
 0x12e   :  { %v147_v39 = vsel %vm146_vm1, %v136_v38, 0.0  ;;  %v167_v54 = vmul.f32 30.0, %v136_v38 }
 0x12f   :  { %148 = vadd.xlane.f32.xlu1 %v147_v39 }
 0x1bc   :  { %v149_v40 = vpop.xlane.xlu1 %148 }
 0x1bd   :  { %v150_v41 = vmul.f32 %v149_v40, %v149_v40  ;;  %v164_v48 = vmul.f32 30.0, %v149_v40  ;;  %v160_v50 = vmul.f32 26.327477, %v149_v40  ;;  %vm163_vm4 = vcmp.gt.f32.partialorder %v149_v40, -0.87758255 }
 0x1bf   :  { %v151_v42 = vsub.f32 1.0, %v150_v41  ;;  %v186_v53 = vadd.f32 -7.191383, %v164_v48 }
 0x1c1   :  { %v152_v43 = vmax.f32 %v151_v42, 0.0 }
 0x1c3   :  { %272 = vrsqrt.f32 %v152_v43  ;;  %vm155_vm2 = vcmp.eq.f32.partialorder %v152_v43, inf  ;;  %v158_v46 = vand.u32 2147483648, %v152_v43  ;;  %vm157_vm3 = vcmp.eq.f32.partialorder %v152_v43, 0.0 }
 0x1cd   :  { %v273_v44 = vpop.eup %272 }
 0x1ce   :  { %v154_v45 = vmul.f32 %v273_v44, %v152_v43 }
 0x1d0   :  { %v156_v47 = vsel %vm155_vm2, %v152_v43, %v154_v45 }
 0x1d1   :  { %v159_v49 = vsel %vm157_vm3, %v158_v46, %v156_v47 }
 0x1d2   :  { %v161_v51 = vmul.f32 14.382766, %v159_v49 }
 0x1d4   :  { %v162_v52 = vsub.f32 %v160_v50, %v161_v51 }
 0x1d6   :  { %v166_v55 = vsel %vm163_vm4, %v162_v52, %v186_v53 }
 0x1d7   :  { %v168_v56 = vsel %vm146_vm1, %v166_v55, %v167_v54 }
 0x1d8   :  { %169 = vst [vmem:[#allocation5] sm:$0xff] %v168_v56 }
 0x1d9   :  { %307 = shalt.err (!%p304_p12)
}
 0x1da   :  { %s308_s15 = scalar_lea.hbm %s403_s5, 128 }
 0x1db   :  { %p309_p13 = scmp.ne.s32.totalorder %s403_s5, %s308_s15  ;;  %p312_p0 = scmp.lt.u32.totalorder %s308_s15, %s403_s5 }
 0x1dd   :  { %p314_p1 = pnand %p312_p0, %p309_p13 }
 0x1df   :  { %317 = shalt.err (!%p314_p1)
}
 0x1e0   :  { %179 = dma.vmem_to_hbm [thread:$0]  %s177_s3, 128, %s403_s5, [#allocation4]  }
 0x1e1   :  { %320 = dma.done.wait [#allocation4], 128  }
 0x1e2   :  { %321 = vsyncadd [#allocation4], 4294967168 }
 0x1e3   :  { %183 = vsyncpa [#allocation3], 1 }
 0x1e4   :  { %184 = vsyncpa [#allocation4], 1 }

</bundles_post_ra>
